<compile_context>
chip_gen: v7x
topology: tpu7x:2x2x1
jax: 0.10.0
libtpu: 0.0.40
codegen_flags: <defaults>
</compile_context>

<pallas_src>
import functools

import jax
import jax.numpy as jnp
from jax import lax
from jax.experimental import pallas as pl
from jax.experimental.pallas import tpu as pltpu

# Normalized 3x3 blur weights (for the pure-JAX reference only).
_K_LIST = [[1.0 / 16, 2.0 / 16, 1.0 / 16],
           [2.0 / 16, 4.0 / 16, 2.0 / 16],
           [1.0 / 16, 2.0 / 16, 1.0 / 16]]


def _cdiv(a, b):
    return -(-a // b)


def _tpu_defaults():
    """Best-effort (vmem_capacity_bytes, num_tensorcores) with safe fallbacks."""
    vmem_cap = None
    cores = 1
    try:
        info = pltpu.get_tpu_info()
        vmem_cap = getattr(info, "vmem_capacity_bytes", None)
        for name in ("num_cores", "cores_per_chip", "num_tensorcores",
                     "tensorcores_per_chip"):
            v = getattr(info, name, None)
            if isinstance(v, int) and v > 0:
                cores = v
                break
    except Exception:
        pass
    if not vmem_cap:
        vmem_cap = 64 * 1024 * 1024          # conservative (v7x-sized) fallback
    return int(vmem_cap), int(cores)


def _blur_flat_kernel(x_ref, o_ref, *, H, W):
    """Whole-plane path.  Block (nt, H*W): each block row is one flattened plane."""
    L = H * W
    x = x_ref[...].astype(jnp.float32)

    flat = lax.broadcasted_iota(jnp.int32, (1, L), 1)
    col = flat % W
    first_col = col == 0
    last_col = col == (W - 1)
    first_row = flat < W
    last_row = flat >= (H - 1) * W

    # Width pass: [1, 2, 1] along each image row (reflect), lane rolls by +/-1.
    # (Non-negative shifts only; roll(x, L-1) == shift by -1 on a length-L axis.)
    p1 = pltpu.roll(x, 1, axis=1)        # x[j-1] (circular)
    n1 = pltpu.roll(x, L - 1, axis=1)    # x[j+1] (circular)
    left = jnp.where(first_col, n1, p1)      # reflect: left[0] = x[1]
    right = jnp.where(last_col, p1, n1)      # reflect: right[W-1] = x[W-2]
    h = left + right + 2.0 * x

    # Height pass: [1, 2, 1] down each column (reflect), lane rolls by +/-W.
    up_c = pltpu.roll(h, W, axis=1)          # h[row-1]
    dn_c = pltpu.roll(h, L - W, axis=1)      # h[row+1]
    up = jnp.where(first_row, dn_c, up_c)    # reflect: up[0]   = h[1]
    down = jnp.where(last_row, up_c, dn_c)   # reflect: down[H-1] = h[H-2]

    o_ref[...] = ((up + down + 2.0 * h) * (1.0 / 16.0)).astype(o_ref.dtype)


def _blur_tiled_kernel(x_ref, x_hbm, o_ref, halo, sem, *, H, W, TH):
    """Large-plane path.  Block (1, TH, W); 1-row halos fetched by manual DMA."""
    p = pl.program_id(0)
    t = pl.program_id(1)

    # Rows just above / below this tile (clamped; clamped values are only ever
    # read at positions that the global reflect masks below overwrite anyway).
    top_row = jnp.maximum(t * TH - 1, 0)
    bot_row = jnp.minimum(t * TH + TH, H - 1)
    top_cp = pltpu.make_async_copy(x_hbm.at[p, top_row], halo.at[0], sem.at[0])
    bot_cp = pltpu.make_async_copy(x_hbm.at[p, bot_row], halo.at[1], sem.at[1])
    top_cp.start()
    bot_cp.start()

    col = lax.broadcasted_iota(jnp.int32, (1, W), 1)
    first_col = col == 0
    last_col = col == (W - 1)

    def wpass(a):  # [1, 2, 1] along the last axis with reflect borders
        pm = pltpu.roll(a, 1, axis=1)        # a[j-1] (circular)
        nx = pltpu.roll(a, W - 1, axis=1)    # a[j+1] (circular)
        return jnp.where(first_col, nx, pm) + jnp.where(last_col, pm, nx) + 2.0 * a

    x = x_ref[0].astype(jnp.float32)         # (TH, W)
    h = wpass(x)                             # overlaps with the halo DMAs

    top_cp.wait()
    bot_cp.wait()
    hh = wpass(halo[...].astype(jnp.float32))   # (2, W)
    h_top = hh[0:1]
    h_bot = hh[1:2]

    # Height pass with 1-row halos + global reflect at rows 0 and H-1.
    up_c = pltpu.roll(h, 1, axis=0)          # h[r-1] (circular within tile)
    dn_c = pltpu.roll(h, TH - 1, axis=0)     # h[r+1] (circular within tile)
    lrow = lax.broadcasted_iota(jnp.int32, (TH, 1), 0)
    up_raw = jnp.where(lrow == 0, h_top, up_c)
    dn_raw = jnp.where(lrow == TH - 1, h_bot, dn_c)
    grow = lrow + t * TH                     # global row index
    up = jnp.where(grow == 0, dn_raw, up_raw)
    down = jnp.where(grow == H - 1, up_raw, dn_raw)

    o_ref[0] = ((up + down + 2.0 * h) * (1.0 / 16.0)).astype(o_ref.dtype)


def blur(x, *, block_budget_bytes=None):
    """x: (B, C, H, W) float array. Returns the blurred array, same shape/dtype."""
    B, C, H, W = x.shape
    assert H >= 2 and W >= 2, "reflect padding needs H, W >= 2"
    N = B * C
    L = H * W
    itemsize = x.dtype.itemsize

    vmem_cap, cores = _tpu_defaults()
    vmem_limit = int(min(vmem_cap * 3 // 4, 96 * 1024 * 1024))
    if block_budget_bytes is None:
        # ~8 MiB I/O blocks on 128-MiB-VMEM parts, ~4 MiB on 64-MiB (v7x).
        block_budget_bytes = min(8 * 1024 * 1024, vmem_cap // 16)

    # Per-plane VMEM footprint: double-buffered in+out blocks (io dtype) plus
    # ~6 live f32 temporaries inside the kernel.
    plane_cost = 4 * L * itemsize + 24 * L
    nt_vmem = (vmem_limit * 7 // 10) // plane_cost
    nt_io = block_budget_bytes // (L * itemsize)
    nt_max = min(nt_vmem, nt_io)

    cost = pl.CostEstimate(flops=10 * N * L, transcendentals=0,
                           bytes_accessed=2 * N * L * itemsize)

    if nt_max >= N or nt_max >= 8:
        # ---- Whole-plane path: flattened, lane-dense (N, H*W) layout. ----
        # Block's sublane dim must be N or a multiple of 8.
        nt = N if nt_max >= N else 8 * (nt_max // 8)
        if cores > 1 and N >= 8 * cores:
            # Split into core-balanced, 8-aligned blocks on multi-TC parts.
            nt = min(nt, 8 * _cdiv(_cdiv(N, cores), 8))
        num_blocks = _cdiv(N, nt)
        out = pl.pallas_call(
            functools.partial(_blur_flat_kernel, H=H, W=W),
            out_shape=jax.ShapeDtypeStruct((N, L), x.dtype),
            grid=(num_blocks,),
            in_specs=[pl.BlockSpec((nt, L), lambda i: (i, 0))],
            out_specs=pl.BlockSpec((nt, L), lambda i: (i, 0)),
            compiler_params=pltpu.CompilerParams(
                dimension_semantics=("parallel",),
                vmem_limit_bytes=vmem_limit),
            cost_estimate=cost,
        )(x.reshape(N, L))
        return out.reshape(B, C, H, W)

    # ---- Large-plane path: tile along H, manual 1-row halo DMAs. ----
    row_cost = 4 * W * itemsize + 24 * W
    th_vmem = max(8, (vmem_limit * 7 // 10) // row_cost)
    th_io = max(8, block_budget_bytes // (W * itemsize))
    TH = max(8, 8 * (min(th_vmem, th_io) // 8))
    TH = min(TH, 8 * _cdiv(H, 8))
    num_h = _cdiv(H, TH)

    xr = x.reshape(N, H, W)
    out = pl.pallas_call(
        functools.partial(_blur_tiled_kernel, H=H, W=W, TH=TH),
        out_shape=jax.ShapeDtypeStruct((N, H, W), x.dtype),
        grid=(N, num_h),
        in_specs=[pl.BlockSpec((1, TH, W), lambda p, t: (p, t, 0)),
                  pl.BlockSpec(memory_space=pl.ANY)],
        out_specs=pl.BlockSpec((1, TH, W), lambda p, t: (p, t, 0)),
        scratch_shapes=[pltpu.VMEM((2, W), x.dtype),
                        pltpu.SemaphoreType.DMA((2,))],
        compiler_params=pltpu.CompilerParams(
            dimension_semantics=("parallel", "parallel"),
            vmem_limit_bytes=vmem_limit),
        cost_estimate=cost,
    )(xr, xr)
    return out.reshape(B, C, H, W)


def _reference_blur(x):
    """Pure-JAX reference (depthwise 3x3, reflect pad, normalized kernel)."""
    B, C, H, W = x.shape
    xpad = jnp.pad(x, ((0, 0), (0, 0), (1, 1), (1, 1)), mode="reflect")
    acc = jnp.zeros_like(x, dtype=jnp.float32)
    for i in range(3):
        for j in range(3):
            acc = acc + _K_LIST[i][j] * xpad[:, :, i:i + H, j:j + W].astype(jnp.float32)
    return acc.astype(x.dtype)


if __name__ == "__main__":
    key = jax.random.PRNGKey(0)
    B, C, H, W = 2, 4, 16, 16
    x = jax.random.normal(key, (B, C, H, W), dtype=jnp.float32)

    ref = _reference_blur(x)

    # Main (whole-plane, lane-dense) path.
    out = blur(x)
    jax.block_until_ready(out)
    assert out.shape == (B, C, H, W)
    assert jnp.allclose(out, ref, atol=1e-5, rtol=1e-5)

    # Force the large-plane (H-tiled, manual-halo-DMA) path at small shape to
    # exercise its cross-tile halos and boundary reflection.
    out_tiled = blur(x, block_budget_bytes=512)
    jax.block_until_ready(out_tiled)
    assert jnp.allclose(out_tiled, ref, atol=1e-5, rtol=1e-5)

    print("KERNEL_OK")
</pallas_src>

<mosaic_0001>
module attributes {stable_mosaic.version = 11 : i64} {
  func.func @_blur_flat_kernel(%arg0: i32, %arg1: memref<8x256xf32, #tpu.memory_space<vmem>>, %arg2: memref<8x256xf32, #tpu.memory_space<vmem>>) attributes {dimension_semantics = [#tpu.dimension_semantics<parallel>], iteration_bounds = array<i64: 1>, scalar_prefetch = 0 : i64, scratch_operands = 0 : i64, tpu.core_type = #tpu.core_type<tc>, window_params = [{transform_indices = @transform_0, window_bounds = array<i64: 8, 256>}, {transform_indices = @transform_1, window_bounds = array<i64: 8, 256>}]} {
    %c0 = arith.constant 0 : index
    %c0_0 = arith.constant 0 : index
    %0 = vector.load %arg1[%c0, %c0_0] : memref<8x256xf32, #tpu.memory_space<vmem>>, vector<8x256xf32>
    %1 = tpu.iota {dimensions = array<i32: 1>} : vector<1x256xi32>
    %c16_i32 = arith.constant 16 : i32
    %c0_i32 = arith.constant 0 : i32
    %2 = arith.cmpi eq, %c16_i32, %c0_i32 : i32
    %c1_i32 = arith.constant 1 : i32
    %3 = arith.select %2, %c1_i32, %c16_i32 : i32
    %4 = vector.broadcast %3 : i32 to vector<1x256xi32>
    %5 = arith.remsi %1, %4 : vector<1x256xi32>
    %c0_i32_1 = arith.constant 0 : i32
    %6 = vector.broadcast %c0_i32_1 : i32 to vector<1x256xi32>
    %7 = arith.cmpi ne, %5, %6 : vector<1x256xi32>
    %c0_i32_2 = arith.constant 0 : i32
    %8 = vector.broadcast %c0_i32_2 : i32 to vector<1x256xi32>
    %9 = arith.cmpi slt, %5, %8 : vector<1x256xi32>
    %c0_i32_3 = arith.constant 0 : i32
    %10 = arith.cmpi slt, %3, %c0_i32_3 : i32
    %11 = vector.broadcast %10 : i1 to vector<1x256xi1>
    %12 = vector.broadcast %11 : vector<1x256xi1> to vector<1x256xi1>
    %13 = arith.xori %9, %12 : vector<1x256xi1>
    %14 = arith.andi %13, %7 : vector<1x256xi1>
    %15 = vector.broadcast %3 : i32 to vector<1x256xi32>
    %16 = arith.addi %5, %15 : vector<1x256xi32>
    %17 = arith.select %14, %16, %5 : vector<1x256xi1>, vector<1x256xi32>
    %c0_i32_4 = arith.constant 0 : i32
    %18 = vector.broadcast %c0_i32_4 : i32 to vector<1x256xi32>
    %19 = arith.cmpi eq, %17, %18 : vector<1x256xi32>
    %c15_i32 = arith.constant 15 : i32
    %20 = vector.broadcast %c15_i32 : i32 to vector<1x256xi32>
    %21 = arith.cmpi eq, %17, %20 : vector<1x256xi32>
    %c16_i32_5 = arith.constant 16 : i32
    %22 = vector.broadcast %c16_i32_5 : i32 to vector<1x256xi32>
    %23 = arith.cmpi slt, %1, %22 : vector<1x256xi32>
    %c240_i32 = arith.constant 240 : i32
    %24 = vector.broadcast %c240_i32 : i32 to vector<1x256xi32>
    %25 = arith.cmpi sge, %1, %24 : vector<1x256xi32>
    %c1_i32_6 = arith.constant 1 : i32
    %26 = tpu.dynamic_rotate %0 by %c1_i32_6 dim 1 : vector<8x256xf32>, i32 -> vector<8x256xf32>
    %c255_i32 = arith.constant 255 : i32
    %27 = tpu.dynamic_rotate %0 by %c255_i32 dim 1 : vector<8x256xf32>, i32 -> vector<8x256xf32>
    %28 = vector.shape_cast %19 : vector<1x256xi1> to vector<1x256xi1>
    %29 = vector.broadcast %28 : vector<1x256xi1> to vector<8x256xi1>
    %30 = arith.select %29, %27, %26 : vector<8x256xi1>, vector<8x256xf32>
    %31 = vector.shape_cast %21 : vector<1x256xi1> to vector<1x256xi1>
    %32 = vector.broadcast %31 : vector<1x256xi1> to vector<8x256xi1>
    %33 = arith.select %32, %26, %27 : vector<8x256xi1>, vector<8x256xf32>
    %34 = arith.addf %30, %33 : vector<8x256xf32>
    %cst = arith.constant 2.000000e+00 : f32
    %35 = vector.broadcast %cst : f32 to vector<8x256xf32>
    %36 = arith.mulf %35, %0 : vector<8x256xf32>
    %37 = arith.addf %34, %36 : vector<8x256xf32>
    %c16_i32_7 = arith.constant 16 : i32
    %38 = tpu.dynamic_rotate %37 by %c16_i32_7 dim 1 : vector<8x256xf32>, i32 -> vector<8x256xf32>
    %c240_i32_8 = arith.constant 240 : i32
    %39 = tpu.dynamic_rotate %37 by %c240_i32_8 dim 1 : vector<8x256xf32>, i32 -> vector<8x256xf32>
    %40 = vector.shape_cast %23 : vector<1x256xi1> to vector<1x256xi1>
    %41 = vector.broadcast %40 : vector<1x256xi1> to vector<8x256xi1>
    %42 = arith.select %41, %39, %38 : vector<8x256xi1>, vector<8x256xf32>
    %43 = vector.shape_cast %25 : vector<1x256xi1> to vector<1x256xi1>
    %44 = vector.broadcast %43 : vector<1x256xi1> to vector<8x256xi1>
    %45 = arith.select %44, %38, %39 : vector<8x256xi1>, vector<8x256xf32>
    %46 = arith.addf %42, %45 : vector<8x256xf32>
    %cst_9 = arith.constant 2.000000e+00 : f32
    %47 = vector.broadcast %cst_9 : f32 to vector<8x256xf32>
    %48 = arith.mulf %47, %37 : vector<8x256xf32>
    %49 = arith.addf %46, %48 : vector<8x256xf32>
    %cst_10 = arith.constant 6.250000e-02 : f32
    %50 = vector.broadcast %cst_10 : f32 to vector<8x256xf32>
    %51 = arith.mulf %49, %50 : vector<8x256xf32>
    %c0_11 = arith.constant 0 : index
    %c0_12 = arith.constant 0 : index
    %52 = vector.load %arg2[%c0_11, %c0_12] : memref<8x256xf32, #tpu.memory_space<vmem>>, vector<8x256xf32>
    tpu.vector_store %arg2[%c0_11, %c0_12], %51 {strides = array<i32>} : memref<8x256xf32, #tpu.memory_space<vmem>>, vector<8x256xf32>,
    return
  }
  func.func @transform_0(%arg0: i32) -> (i32, i32) {
    %c0_i32 = arith.constant 0 : i32
    %c0_i32_0 = arith.constant 0 : i32
    return %arg0, %c0_i32 : i32, i32
  }
  func.func @transform_1(%arg0: i32) -> (i32, i32) {
    %c0_i32 = arith.constant 0 : i32
    %c0_i32_0 = arith.constant 0 : i32
    return %arg0, %c0_i32 : i32, i32
  }
}

</mosaic_0001>

<bundles_post_ra>
// kernel: tpu_custom_call.1
= control target key start
LH: loop header
LB: loop body
LE: loop exit
PB: predicated region body
PF: predicated region fallthrough
CT: control target
= control target key end

     0   :  { %6 = vsyncpa [#allocation3], 0  ;;  %s246_s0 = inlined_call_operand.hbm [shape: f32[8,256], index: 0, kind: input, shape index: {}]   ;;  %s247_s1 = inlined_call_operand.hbm [shape: f32[8,256], index: 1, kind: output, shape index: {}]  }
   0x1   :  { %7 = vsyncpa [#allocation4], 0  ;;  %s194_s6 = smov [#allocation2]   ;;  %s146_s10 = scalar_lea.hbm %s246_s0, 256 }
   0x2   :  { %s14_s7 = sshll.u32 %s194_s6, 4  ;;  %p147_p0 = scmp.ne.s32.totalorder %s246_s0, %s146_s10  ;;  %s15_s7 = int_to_ptr.vmem [resolvable:$true] %s14_s7 }
   0x3   :  { %p150_p1 = scmp.lt.u32.totalorder %s146_s10, %s246_s0 }
   0x5   :  { %p152_p2 = pnand %p150_p1, %p147_p0 }
   0x7   :  { %155 = shalt.err (!%p152_p2)
}
   0x8   :  { %s156_s15 = scalar_lea.vmem %s15_s7, 256  ;;  %p161_p4 = scmp.lt.s32.totalorder %s15_s7, %s15_s7 }
   0x9   :  { %p157_p3 = scmp.ne.s32.totalorder %s15_s7, %s156_s15  ;;  %p162_p5 = scmp.lt.s32.totalorder %s156_s15, %s156_s15 }
   0xb   :  { %p163_p6 = por %p162_p5, %p161_p4 }
   0xd   :  { %p164_p7 = pnand %p163_p6, %p157_p3 }
   0xf   :  { %167 = shalt.err (!%p164_p7)
}
  0x10   :  { %17 = dma.hbm_to_vmem [thread:$0]  %s246_s0, 256, %s15_s7, [#allocation3]  }
  0x11   :  { %190 = dma.done.wait [#allocation3], 256  }
  0x12   :  { %191 = vsyncadd [#allocation3], 4294967040  ;;  %v21_v0 = vld [vmem:[#allocation2] sm:$0xff]  ;;  %s195_s18 = smov 127   ;;  %s196_s19 = smov 1   ;;  %v22_v1 = vld [vmem:[#allocation2 + $0x8] sm:$0xff]  ;;  %v23_v2 = vlaneseq }
  0x13   :  { %65 = vrot.lane.b32.xlu1 %v21_v0, %s195_s18  ;;  %58 = vrot.lane.b32.xlu0 %v21_v0, %s196_s19  ;;  %v86_v11 = vmul.f32 2.0, %v21_v0  ;;  %v87_v12 = vmul.f32 2.0, %v22_v1  ;;  %s197_s0 = smov 16   ;;  %s198_s20 = smov 112  }
  0x14   :  { %v24_v3 = vand.u32 127, %v23_v2  ;;  %s199_s21 = smov [#allocation5]  }
  0x15   :  { %s131_s22 = sshll.u32 %s199_s21, 4  ;;  %s132_s22 = int_to_ptr.vmem [resolvable:$true] %s131_s22 }
  0x16   :  { %v25_v4 = vadd.s32 128, %v24_v3  ;;  %v30_v5 = vand.u32 15, %v24_v3  ;;  %vm69_vm0 = vcmp.lt.s32.totalorder %v24_v3, 127  ;;  %vm62_vm1 = vcmp.lt.s32.totalorder %v24_v3, 1  ;;  %s168_s23 = scalar_lea.vmem %s132_s22, 256  ;;  %p173_p9 = scmp.lt.s32.totalorder %s132_s22, %s132_s22 }
  0x17   :  { %67 = vrot.lane.b32.xlu1 %v22_v1, %s195_s18  ;;  %60 = vrot.lane.b32.xlu0 %v22_v1, %s196_s19  ;;  %vm54_vm6 = vcmp.lt.s32.totalorder %v24_v3, 16  ;;  %vm100_vm7 = vcmp.lt.s32.totalorder %v24_v3, 112  ;;  %p169_p8 = scmp.ne.s32.totalorder %s132_s22, %s168_s23  ;;  %p174_p10 = scmp.lt.s32.totalorder %s168_s23, %s168_s23 }
  0x18   :  { %v37_v6 = vand.u32 15, %v25_v4  ;;  %vm222_vm2 = vcmp.eq.s32.totalorder %v30_v5, 0  ;;  %vm52_vm4 = vcmp.eq.s32.totalorder %v30_v5, 15  ;;  %vm57_vm8 = vcmp.ge.s32.totalorder %v25_v4, 240 }
  0x19   :  { %p175_p11 = por %p174_p10, %p173_p9 }
  0x1a   :  { %vm226_vm3 = vcmp.eq.s32.totalorder %v37_v6, 0  ;;  %vm53_vm5 = vcmp.eq.s32.totalorder %v37_v6, 15 }
  0x1b   :  { %p176_p12 = pnand %p175_p11, %p169_p8 }
  0x85   :  { %v66_v7 = vpop.permute.xlu1 %65  ;;  %v59_v8 = vpop.permute.xlu0 %58 }
  0x89   :  { %v68_v13 = vpop.permute.xlu1 %67  ;;  %v61_v14 = vpop.permute.xlu0 %60 }
  0x8a   :  { %v70_v15 = vsel %vm69_vm0, %v66_v7, %v68_v13  ;;  %v71_v16 = vsel %vm69_vm0, %v68_v13, %v66_v7  ;;  %v63_v17 = vsel %vm62_vm1, %v59_v8, %v61_v14  ;;  %v64_v18 = vsel %vm62_vm1, %v61_v14, %v59_v8 }
  0x8b   :  { %v76_v19 = vsel %vm222_vm2, %v70_v15, %v64_v18  ;;  %v77_v20 = vsel %vm226_vm3, %v71_v16, %v63_v17  ;;  %v82_v21 = vsel %vm52_vm4, %v64_v18, %v70_v15  ;;  %v83_v22 = vsel %vm53_vm5, %v63_v17, %v71_v16 }
  0x8c   :  { %v84_v23 = vadd.f32 %v82_v21, %v76_v19  ;;  %v85_v24 = vadd.f32 %v83_v22, %v77_v20 }
  0x8e   :  { %v89_v25 = vadd.f32 %v87_v12, %v85_v24  ;;  %v88_v26 = vadd.f32 %v86_v11, %v84_v23 }
  0x90   :  { %92 = vrot.lane.b32.xlu1 %v89_v25, %s197_s0  ;;  %90 = vrot.lane.b32.xlu0 %v88_v26, %s197_s0  ;;  %v117_v39 = vmul.f32 2.0, %v88_v26  ;;  %v118_v40 = vmul.f32 2.0, %v89_v25 }
  0x94   :  { %98 = vrot.lane.b32.xlu1 %v89_v25, %s198_s20  ;;  %96 = vrot.lane.b32.xlu0 %v88_v26, %s198_s20 }
 0x102   :  { %v93_v27 = vpop.permute.xlu1 %92  ;;  %v91_v28 = vpop.permute.xlu0 %90 }
 0x103   :  { %v94_v31 = vsel %vm54_vm6, %v91_v28, %v93_v27  ;;  %v95_v32 = vsel %vm54_vm6, %v93_v27, %v91_v28 }
 0x106   :  { %v99_v29 = vpop.permute.xlu1 %98  ;;  %v97_v30 = vpop.permute.xlu0 %96 }
 0x107   :  { %v101_v33 = vsel %vm100_vm7, %v97_v30, %v99_v29  ;;  %v102_v34 = vsel %vm100_vm7, %v99_v29, %v97_v30 }
 0x108   :  { %v107_v35 = vsel %vm54_vm6, %v101_v33, %v95_v32  ;;  %v114_v36 = vsel %vm57_vm8, %v94_v31, %v102_v34 }
 0x109   :  { %v115_v37 = vadd.f32 %v107_v35, %v101_v33  ;;  %v116_v38 = vadd.f32 %v114_v36, %v94_v31 }
 0x10b   :  { %v119_v41 = vadd.f32 %v117_v39, %v115_v37  ;;  %v120_v42 = vadd.f32 %v118_v40, %v116_v38 }
 0x10d   :  { %v121_v43 = vmul.f32 0.0625, %v119_v41  ;;  %v122_v44 = vmul.f32 0.0625, %v120_v42 }
 0x10f   :  { %123 = vst [vmem:[#allocation5] sm:$0xff] %v121_v43  ;;  %124 = vst [vmem:[#allocation5 + $0x8] sm:$0xff] %v122_v44 }
 0x110   :  { %179 = shalt.err (!%p176_p12)
}
 0x111   :  { %s180_s26 = scalar_lea.hbm %s247_s1, 256 }
 0x112   :  { %p181_p13 = scmp.ne.s32.totalorder %s247_s1, %s180_s26  ;;  %p184_p0 = scmp.lt.u32.totalorder %s180_s26, %s247_s1 }
 0x114   :  { %p186_p1 = pnand %p184_p0, %p181_p13 }
 0x116   :  { %189 = shalt.err (!%p186_p1)
}
 0x117   :  { %134 = dma.vmem_to_hbm [thread:$0]  %s132_s22, 256, %s247_s1, [#allocation4]  }
 0x118   :  { %192 = dma.done.wait [#allocation4], 256  }
 0x119   :  { %193 = vsyncadd [#allocation4], 4294967040 }
 0x11a   :  { %138 = vsyncpa [#allocation3], 1 }
 0x11b   :  { %139 = vsyncpa [#allocation4], 1 }

</bundles_post_ra>
